<compile_context>
chip_gen: v5e
topology: v5e:2x2
jax: 0.10.0
libtpu: 0.0.40
codegen_flags: <defaults>
</compile_context>

<pallas_src>
import jax
import jax.numpy as jnp
from jax import lax
from jax.experimental import pallas as pl
from jax.experimental.pallas import tpu as pltpu


def _connector_kernel(h_ref, c_ref, w_ref, b_ref, oh_ref, oc_ref):
    """One (out-tile, batch-tile) step of the fused bi2uni connector.

    h_ref, c_ref : (num_l, tb, H)  activations in native [layer, batch, H] layout
    w_ref        : (num_l, H, tn)  fch weight, (K, N) per layer -> natural MXU dot
    b_ref        : (1, tn)         f32 bias (lane padded)
    oh_ref/oc_ref: (tb, tn)        f32 outputs
    """
    num_l, tb, _ = h_ref.shape
    tn = oh_ref.shape[-1]

    # Bias-initialized f32 accumulator held in vregs: no VMEM scratch round
    # trips and no separate finalize (bias add / copy / cast) pass.
    acc = jnp.broadcast_to(b_ref[...], (2 * tb, tn)).astype(jnp.float32)

    # Single sublane concat so each layer's weight tile is pushed through the
    # MXU once and serves BOTH the h and c linears (the module applies fch to
    # both -- faithful to the original quirk; fcc is never used).
    x = jnp.concatenate([h_ref[...], c_ref[...]], axis=1)   # (num_l, 2*tb, H)

    # The 2*num_layer reduction is unrolled in-kernel (tiny static trip count)
    # instead of being a grid axis: no per-step overhead, no accumulator
    # VMEM traffic, one big DMA per operand.
    for l in range(num_l):
        acc = acc + jnp.dot(x[l], w_ref[l], preferred_element_type=jnp.float32)

    oh_ref[...] = acc[:tb].astype(oh_ref.dtype)
    oc_ref[...] = acc[tb:].astype(oc_ref.dtype)


def prepare_fch_params(w_fch, b_fch, *, num_dirs_layers, hidden_size,
                       compute_dtype=jnp.bfloat16, lane=128):
    """One-time parameter relayout (model-load time, not per step).

    PyTorch nn.Linear weight [out, 2L*H] -> [2L, H, out_pad]:
      * per-layer (K, N) layout so the kernel issues natural (M,K)x(K,N) MXU
        dots with no transposes,
      * output features zero-padded to a multiple of 128 so stores are
        lane-dense (unmasked vst) instead of masked vst.msk partial stores.
    Bias -> (1, out_pad), kept in f32.
    """
    out = w_fch.shape[0]
    out_pad = out if out % lane == 0 else (out // lane + 1) * lane
    w3 = w_fch.reshape(out, num_dirs_layers, hidden_size).transpose(1, 2, 0)
    b2 = b_fch.reshape(1, out)
    if out_pad != out:
        w3 = jnp.pad(w3, ((0, 0), (0, 0), (0, out_pad - out)))
        b2 = jnp.pad(b2, ((0, 0), (0, out_pad - out)))
    return w3.astype(compute_dtype), b2.astype(jnp.float32)


def _vmem_budget_bytes():
    """~75% of this generation's per-core VMEM (v5e/v6e: 128 MiB, v7x: 64 MiB)."""
    cap = None
    try:
        cap = getattr(pltpu.get_tpu_info(), "vmem_capacity_bytes", None)
    except Exception:
        cap = None
    if not cap:
        cap = 64 * 1024 * 1024          # conservative (v7x-sized) fallback
    return min(int(cap * 0.75), 100 * 1024 * 1024)


def _pick_tile(dim, align, cap):
    """Largest multiple of `align` that divides `dim` and is <= cap, otherwise
    the full extent (always a legal block).  Replaces the old silent
    full-extent fallback that could blow VMEM for large ragged dims."""
    if dim <= cap:
        return dim
    t = (cap // align) * align
    while t >= align:
        if dim % t == 0:
            return t
        t -= align
    # TODO(synk): pad-and-mask with a cdiv grid for huge dims with no aligned divisor.
    return dim


def bi2uni_connector_lstm(h, c, w_fch_kn, b_fch_pad, output_size):
    """h, c: [2L, B, H]; w_fch_kn: [2L, H, out_pad]; b: [1, out_pad] (f32)
    -> (new_h [1,B,out], new_c [1,B,out]) in f32."""
    num_l, B, H = h.shape
    num_l_w, H_w, out_pad = w_fch_kn.shape
    assert (num_l_w, H_w) == (num_l, H)
    assert b_fch_pad.shape == (1, out_pad)

    compute_dtype = w_fch_kn.dtype
    h = h.astype(compute_dtype)     # bf16 activations: half HBM/VMEM traffic,
    c = c.astype(compute_dtype)     # bf16 MXU path; accumulation stays f32.

    budget = _vmem_budget_bytes()
    big = budget >= 72 * (1 << 20)                      # v5e/v6e-sized VMEM
    sub_align = 16 if compute_dtype == jnp.bfloat16 else 8
    tb = _pick_tile(B, sub_align, 512 if big else 256)  # batch rows (sublane)
    tn = _pick_tile(out_pad, 128, 1024 if big else 512) # out features (lane)
    # TODO(synk): for very large num_l*H the full-K blocks need an extra H
    # (reduction) grid axis on v7x's 64 MiB VMEM; unnecessary at module sizes.
    # TODO(synk): on v7x, if the grid collapses to (1, 1) at deployment shapes
    # and the op is compute-bound, split B (or out_pad) into two tiles so both
    # TensorCores get work.

    grid = (out_pad // tn, B // tb)   # j (out tiles) outer, i (batch) inner:
                                      # the weight block index is constant
                                      # across the inner batch sweep -> W is
                                      # DMA'd from HBM once per out-tile.

    itemsize = jnp.dtype(compute_dtype).itemsize
    cost = pl.CostEstimate(
        flops=2 * (2 * B) * out_pad * (num_l * H),
        transcendentals=0,
        bytes_accessed=(2 * num_l * B * H * itemsize      # h + c
                        + num_l * H * out_pad * itemsize  # weight
                        + out_pad * 4                     # bias
                        + 2 * B * out_pad * 4),           # outputs
    )

    new_h, new_c = pl.pallas_call(
        _connector_kernel,
        out_shape=(
            jax.ShapeDtypeStruct((B, out_pad), jnp.float32),
            jax.ShapeDtypeStruct((B, out_pad), jnp.float32),
        ),
        grid=grid,
        in_specs=[
            pl.BlockSpec((num_l, tb, H), lambda j, i: (0, i, 0)),   # h
            pl.BlockSpec((num_l, tb, H), lambda j, i: (0, i, 0)),   # c
            pl.BlockSpec((num_l, H, tn), lambda j, i: (0, 0, j)),   # fch weight
            pl.BlockSpec((1, tn), lambda j, i: (0, j)),             # fch bias
        ],
        out_specs=(
            pl.BlockSpec((tb, tn), lambda j, i: (i, j)),
            pl.BlockSpec((tb, tn), lambda j, i: (i, j)),
        ),
        compiler_params=pltpu.CompilerParams(
            dimension_semantics=("parallel", "parallel"),
            vmem_limit_bytes=budget,
        ),
        cost_estimate=cost,
    )(h, c, w_fch_kn, b_fch_pad)

    if out_pad != output_size:
        new_h = new_h[:, :output_size]
        new_c = new_c[:, :output_size]
    return new_h.reshape(1, B, output_size), new_c.reshape(1, B, output_size)


def _ref_forward(h, c, w, b, hidden_size, output_size):
    """Pure-JAX reference implementing the PyTorch forward exactly."""
    d_in = h.shape[0] * hidden_size
    flat_h = jnp.transpose(h, (1, 0, 2)).reshape(-1, d_in)
    flat_c = jnp.transpose(c, (1, 0, 2)).reshape(-1, d_in)
    new_h = flat_h @ w.T + b
    new_c = flat_c @ w.T + b     # same quirk: fch applied to c as well
    return (new_h.reshape(1, -1, output_size),
            new_c.reshape(1, -1, output_size))


if __name__ == "__main__":
    # Small, module-consistent shapes (batch chosen sublane-tile aligned).
    num_layer = 1            # bi-directional -> leading dim 2*num_layer
    hidden_size = 32
    output_size = 16
    batch = 16
    num_dirs_layers = 2 * num_layer
    d_in = hidden_size * num_dirs_layers     # fch in_features

    key = jax.random.PRNGKey(0)
    k_h, k_c, k_w, k_b = jax.random.split(key, 4)

    h = jax.random.normal(k_h, (num_dirs_layers, batch, hidden_size), jnp.float32)
    c = jax.random.normal(k_c, (num_dirs_layers, batch, hidden_size), jnp.float32)

    # Deterministic nn.Linear-style init: U(-1/sqrt(fan_in), 1/sqrt(fan_in)).
    bound = 1.0 / jnp.sqrt(jnp.float32(d_in))
    w_fch = jax.random.uniform(k_w, (output_size, d_in), jnp.float32, -bound, bound)
    b_fch = jax.random.uniform(k_b, (output_size,), jnp.float32, -bound, bound)
    # TODO(synk): fcc is declared in __init__ but never used in forward
    # (original module quirk); it is intentionally not materialized here.

    # One-time parameter prep (store fch in kernel layout at model-load time).
    w3, b2 = prepare_fch_params(w_fch, b_fch,
                                num_dirs_layers=num_dirs_layers,
                                hidden_size=hidden_size,
                                compute_dtype=jnp.bfloat16)

    new_h, new_c = bi2uni_connector_lstm(h, c, w3, b2, output_size)
    jax.block_until_ready((new_h, new_c))

    assert new_h.shape == (1, batch, output_size)
    assert new_c.shape == (1, batch, output_size)

    # Tight apples-to-apples check: reference with the same bf16 quantization.
    hq = h.astype(jnp.bfloat16).astype(jnp.float32)
    cq = c.astype(jnp.bfloat16).astype(jnp.float32)
    wq = w_fch.astype(jnp.bfloat16).astype(jnp.float32)
    ref_h_q, ref_c_q = _ref_forward(hq, cq, wq, b_fch, hidden_size, output_size)
    assert jnp.allclose(new_h, ref_h_q, atol=1e-4, rtol=1e-4)
    assert jnp.allclose(new_c, ref_c_q, atol=1e-4, rtol=1e-4)

    # Fidelity to the full-f32 PyTorch forward (loose tolerance: bf16 inputs).
    ref_h, ref_c = _ref_forward(h, c, w_fch, b_fch, hidden_size, output_size)
    assert jnp.allclose(new_h, ref_h, atol=5e-2, rtol=5e-2)
    assert jnp.allclose(new_c, ref_c, atol=5e-2, rtol=5e-2)

    print("KERNEL_OK")
</pallas_src>

<mosaic_0001>
module attributes {stable_mosaic.version = 11 : i64} {
  func.func @_connector_kernel(%arg0: i32, %arg1: i32, %arg2: memref<2x16x32xbf16, #tpu.memory_space<vmem>>, %arg3: memref<2x16x32xbf16, #tpu.memory_space<vmem>>, %arg4: memref<2x32x128xbf16, #tpu.memory_space<vmem>>, %arg5: memref<1x128xf32, #tpu.memory_space<vmem>>, %arg6: memref<16x128xf32, #tpu.memory_space<vmem>>, %arg7: memref<16x128xf32, #tpu.memory_space<vmem>>) attributes {dimension_semantics = [#tpu.dimension_semantics<parallel>, #tpu.dimension_semantics<parallel>], iteration_bounds = array<i64: 1, 1>, scalar_prefetch = 0 : i64, scratch_operands = 0 : i64, tpu.core_type = #tpu.core_type<tc>, window_params = [{transform_indices = @transform_0, window_bounds = array<i64: 2, 16, 32>}, {transform_indices = @transform_1, window_bounds = array<i64: 2, 16, 32>}, {transform_indices = @transform_2, window_bounds = array<i64: 2, 32, 128>}, {transform_indices = @transform_3, window_bounds = array<i64: 1, 128>}, {transform_indices = @transform_4, window_bounds = array<i64: 16, 128>}, {transform_indices = @transform_5, window_bounds = array<i64: 16, 128>}]} {
    %c0 = arith.constant 0 : index
    %c0_0 = arith.constant 0 : index
    %0 = vector.load %arg5[%c0, %c0_0] : memref<1x128xf32, #tpu.memory_space<vmem>>, vector<1x128xf32>
    %1 = vector.shape_cast %0 : vector<1x128xf32> to vector<1x128xf32>
    %2 = vector.broadcast %1 : vector<1x128xf32> to vector<32x128xf32>
    %c0_1 = arith.constant 0 : index
    %c0_2 = arith.constant 0 : index
    %c0_3 = arith.constant 0 : index
    %3 = vector.load %arg2[%c0_1, %c0_2, %c0_3] : memref<2x16x32xbf16, #tpu.memory_space<vmem>>, vector<2x16x32xbf16>
    %c0_4 = arith.constant 0 : index
    %c0_5 = arith.constant 0 : index
    %c0_6 = arith.constant 0 : index
    %4 = vector.load %arg3[%c0_4, %c0_5, %c0_6] : memref<2x16x32xbf16, #tpu.memory_space<vmem>>, vector<2x16x32xbf16>
    %5 = tpu.concatenate %3, %4 in 1 : vector<2x16x32xbf16>, vector<2x16x32xbf16> -> vector<2x32x32xbf16>
    %6 = vector.extract_strided_slice %5 {offsets = [0, 0, 0], sizes = [1, 32, 32], strides = [1, 1, 1]} : vector<2x32x32xbf16> to vector<1x32x32xbf16>
    %7 = vector.shape_cast %6 : vector<1x32x32xbf16> to vector<32x32xbf16>
    %c0_7 = arith.constant 0 : index
    %c0_8 = arith.constant 0 : index
    %c0_9 = arith.constant 0 : index
    %8 = vector.load %arg4[%c0_7, %c0_8, %c0_9] : memref<2x32x128xbf16, #tpu.memory_space<vmem>>, vector<1x32x128xbf16>
    %9 = vector.shape_cast %8 : vector<1x32x128xbf16> to vector<32x128xbf16>
    %cst = arith.constant dense<0.000000e+00> : vector<32x128xf32>
    %10 = tpu.matmul %7, %9, %cst {dimension_numbers = #tpu.dot_dimension_numbers<[1], [0], [0], [1], [0, 0, 1, 1], [], []>} : vector<32x32xbf16>, vector<32x128xbf16>, vector<32x128xf32> -> vector<32x128xf32>
    %11 = arith.addf %2, %10 : vector<32x128xf32>
    %12 = vector.extract_strided_slice %5 {offsets = [1, 0, 0], sizes = [1, 32, 32], strides = [1, 1, 1]} : vector<2x32x32xbf16> to vector<1x32x32xbf16>
    %13 = vector.shape_cast %12 : vector<1x32x32xbf16> to vector<32x32xbf16>
    %c1 = arith.constant 1 : index
    %c0_10 = arith.constant 0 : index
    %c0_11 = arith.constant 0 : index
    %14 = vector.load %arg4[%c1, %c0_10, %c0_11] : memref<2x32x128xbf16, #tpu.memory_space<vmem>>, vector<1x32x128xbf16>
    %15 = vector.shape_cast %14 : vector<1x32x128xbf16> to vector<32x128xbf16>
    %cst_12 = arith.constant dense<0.000000e+00> : vector<32x128xf32>
    %16 = tpu.matmul %13, %15, %cst_12 {dimension_numbers = #tpu.dot_dimension_numbers<[1], [0], [0], [1], [0, 0, 1, 1], [], []>} : vector<32x32xbf16>, vector<32x128xbf16>, vector<32x128xf32> -> vector<32x128xf32>
    %17 = arith.addf %11, %16 : vector<32x128xf32>
    %18 = vector.extract_strided_slice %17 {offsets = [0, 0], sizes = [16, 128], strides = [1, 1]} : vector<32x128xf32> to vector<16x128xf32>
    %c0_13 = arith.constant 0 : index
    %c0_14 = arith.constant 0 : index
    %19 = vector.load %arg6[%c0_13, %c0_14] : memref<16x128xf32, #tpu.memory_space<vmem>>, vector<16x128xf32>
    tpu.vector_store %arg6[%c0_13, %c0_14], %18 {strides = array<i32>} : memref<16x128xf32, #tpu.memory_space<vmem>>, vector<16x128xf32>,
    %20 = vector.extract_strided_slice %17 {offsets = [16, 0], sizes = [16, 128], strides = [1, 1]} : vector<32x128xf32> to vector<16x128xf32>
    %c0_15 = arith.constant 0 : index
    %c0_16 = arith.constant 0 : index
    %21 = vector.load %arg7[%c0_15, %c0_16] : memref<16x128xf32, #tpu.memory_space<vmem>>, vector<16x128xf32>
    tpu.vector_store %arg7[%c0_15, %c0_16], %20 {strides = array<i32>} : memref<16x128xf32, #tpu.memory_space<vmem>>, vector<16x128xf32>,
    return
  }
  func.func @transform_0(%arg0: i32, %arg1: i32) -> (i32, i32, i32) {
    %c0_i32 = arith.constant 0 : i32
    %c0_i32_0 = arith.constant 0 : i32
    %c0_i32_1 = arith.constant 0 : i32
    return %c0_i32, %arg1, %c0_i32_0 : i32, i32, i32
  }
  func.func @transform_1(%arg0: i32, %arg1: i32) -> (i32, i32, i32) {
    %c0_i32 = arith.constant 0 : i32
    %c0_i32_0 = arith.constant 0 : i32
    %c0_i32_1 = arith.constant 0 : i32
    return %c0_i32, %arg1, %c0_i32_0 : i32, i32, i32
  }
  func.func @transform_2(%arg0: i32, %arg1: i32) -> (i32, i32, i32) {
    %c0_i32 = arith.constant 0 : i32
    %c0_i32_0 = arith.constant 0 : i32
    %c0_i32_1 = arith.constant 0 : i32
    return %c0_i32, %c0_i32_0, %arg0 : i32, i32, i32
  }
  func.func @transform_3(%arg0: i32, %arg1: i32) -> (i32, i32) {
    %c0_i32 = arith.constant 0 : i32
    %c0_i32_0 = arith.constant 0 : i32
    return %c0_i32, %arg0 : i32, i32
  }
  func.func @transform_4(%arg0: i32, %arg1: i32) -> (i32, i32) {
    %c0_i32 = arith.constant 0 : i32
    return %arg1, %arg0 : i32, i32
  }
  func.func @transform_5(%arg0: i32, %arg1: i32) -> (i32, i32) {
    %c0_i32 = arith.constant 0 : i32
    return %arg1, %arg0 : i32, i32
  }
}

</mosaic_0001>

<bundles_post_ra>
// kernel: tpu_custom_call.1
= control target key start
LH: loop header
LB: loop body
LE: loop exit
PB: predicated region body
PF: predicated region fallthrough
CT: control target
= control target key end

     0   :  { %11 = vsyncpa [#allocation3], 0  ;;  %s478_s0 = inlined_call_operand.hbm [shape: bf16[2,16,32], index: 0, kind: input, shape index: {}]   ;;  %s479_s1 = inlined_call_operand.hbm [shape: bf16[2,16,32], index: 1, kind: input, shape index: {}]   ;;  %s480_s2 = inlined_call_operand.hbm [shape: bf16[2,32,128], index: 2, kind: input, shape index: {}]   ;;  %s481_s3 = inlined_call_operand.vmem [shape: f32[1,128], index: 3, kind: input, shape index: {}]   ;;  %s482_s4 = inlined_call_operand.hbm [shape: f32[16,128], index: 4, kind: output, shape index: {0}]   ;;  %s483_s5 = inlined_call_operand.hbm [shape: f32[16,128], index: 5, kind: output, shape index: {1}]  }
   0x1   :  { %12 = vsyncpa [#allocation6], 0 }
   0x2   :  { %13 = vsyncpa [#allocation4], 0 }
   0x3   :  { %14 = vsyncpa [#allocation10], 0  ;;  %s32_s20 = sshll.u32 %s479_s1, 4  ;;  %s421_s21 = smov [#allocation5]   ;;  %s33_s20 = int_to_ptr.hbm [resolvable:$true] %s32_s20 }
   0x4   :  { %s34_s22 = sshll.u32 %s421_s21, 4  ;;  %s19_s25 = sshll.u32 %s478_s0, 4  ;;  %s35_s22 = int_to_ptr.vmem [resolvable:$true] %s34_s22  ;;  %s20_s25 = int_to_ptr.hbm [resolvable:$true] %s19_s25 }
   0x5   :  { %s422_s26 = smov 64   ;;  %s423_s27 = smov 4  }
   0x6   :  { %40 = dma.hbm_to_vmem [thread:$0]  %s33_s20, 256, %s35_s22, [#allocation6], %s422_s26, %s422_s26, %s423_s27  }
   0x7   :  { %s424_s28 = smov [#allocation2]   ;;  %s45_s7 = sshll.u32 %s480_s2, 4  ;;  %s46_s7 = int_to_ptr.hbm [resolvable:$true] %s45_s7 }
   0x8   :  { %s21_s29 = sshll.u32 %s424_s28, 4  ;;  %s425_s1 = smov [#allocation7]   ;;  %s22_s29 = int_to_ptr.vmem [resolvable:$true] %s21_s29 }
   0x9   :  { %27 = dma.hbm_to_vmem [thread:$0]  %s20_s25, 256, %s22_s29, [#allocation3], %s422_s26, %s422_s26, %s423_s27  }
   0xa   :  { %s47_s8 = sshll.u32 %s425_s1, 4  ;;  %s48_s8 = int_to_ptr.vmem [resolvable:$true] %s47_s8 }
   0xb   :  { %53 = dma.hbm_to_vmem [thread:$0]  %s46_s7, 512, %s48_s8, [#allocation6], %s422_s26, %s422_s26, %s423_s27  }
   0xc   :  { %413 = dma.done.wait [#allocation3], 256  }
   0xd   :  { %414 = vsyncadd [#allocation3], 4294967040 }
   0xe   :  { %415 = dma.done.wait [#allocation6], 768  }
   0xf   :  { %416 = vsyncadd [#allocation6], 4294966528  ;;  %v276_v0 = vld [vmem:[#allocation7 + $0x8] sm:$0xff]  ;;  %v278_v1 = vld [vmem:[#allocation7 + $0x18] sm:$0xff]  ;;  %vm117_vm0 = vcmask 261120   ;;  %s426_s9 = smov [#allocation8]  }
  0x10   :  { %130 = vmatpush.bf16.msra.mxu0 %v276_v0  ;;  %279 = vmatpush.bf16.msra.mxu2 %v276_v0  ;;  %v275_v2 = vld [vmem:[#allocation7] sm:$0xff]  ;;  %v277_v3 = vld [vmem:[#allocation7 + $0x10] sm:$0xff]  ;;  %v272_v6 = vld [vmem:[#allocation2 + $0x8] sm:$0xff]  ;;  %s201_s10 = sshll.u32 %s426_s9, 4  ;;  %s203_s13 = sshll.u32 %s482_s4, 4  ;;  %s202_s10 = int_to_ptr.vmem [resolvable:$true] %s201_s10  ;;  %s204_s13 = int_to_ptr.hbm [resolvable:$true] %s203_s13 }
  0x11   :  { %176 = vmatpush.bf16.msra.mxu1 %v278_v1  ;;  %281 = vmatpush.bf16.msra.mxu3 %v278_v1  ;;  %v271_v4 = vld [vmem:[#allocation2] sm:$0xff]  ;;  %v273_v5 = vld [vmem:[#allocation5] sm:$0xff]  ;;  %v274_v7 = vld [vmem:[#allocation5 + $0x8] sm:$0xff]  ;;  %s216_s17 = sshll.u32 %s483_s5, 4  ;;  %s428_s18 = smov 128   ;;  %s217_s17 = int_to_ptr.hbm [resolvable:$true] %s216_s17 }
  0x12   :  { %v292_v8 = vld [vmem:[%s481_s3] ss:$0 sm:$0xff]  ;;  %s427_s3 = smov [#allocation9]   ;;  %s429_s19 = smov 8  }
  0x13   :  { %s214_s14 = sshll.u32 %s427_s3, 4  ;;  %s215_s14 = int_to_ptr.vmem [resolvable:$true] %s214_s14 }
  0x14   :  { %131 = vmatpush.bf16.msra.mxu0 %v275_v2  ;;  %280 = vmatpush.bf16.msra.mxu2 %v275_v2 }
  0x15   :  { %177 = vmatpush.bf16.msra.mxu1 %v277_v3  ;;  %282 = vmatpush.bf16.msra.mxu3 %v277_v3 }
  0x17   :  { %259 = vmatmul.msk.bf16.vlgmr.msra.gmra.mxu0 %vm117_vm0, %v271_v4  ;;  %260 = vmatmul.msk.bf16.vlgmr.msra.gmra.mxu2 %vm117_vm0, %v273_v5 }
  0x18   :  { %269 = vmatmul.msk.bf16.vlgmr.msra.gmra.mxu1 %vm117_vm0, %v272_v6  ;;  %270 = vmatmul.msk.bf16.vlgmr.msra.gmra.mxu3 %vm117_vm0, %v274_v7 }
  0x94   :  { %v133_v9 = vpop.f32.mrf.mxu0 }
  0x95   :  { %v143_v10 = vadd.f32 %v292_v8, %v133_v9  ;;  %v179_v11 = vpop.f32.mrf.mxu1 }
  0x97   :  { %v189_v12 = vadd.f32 %v179_v11, %v143_v10 }
  0x99   :  { %193 = vst [vmem:[#allocation8] sm:$0xff] %v189_v12 }
  0x9a   :  { %v138_v13 = vpop.f32.mrf.mxu2 }
  0x9b   :  { %v145_v14 = vadd.f32 %v292_v8, %v138_v13  ;;  %v184_v15 = vpop.f32.mrf.mxu3 }
  0x9c   :  { %v135_v16 = vpop.f32.mrf.mxu0 }
  0x9d   :  { %v191_v17 = vadd.f32 %v184_v15, %v145_v14  ;;  %v144_v18 = vadd.f32 %v292_v8, %v135_v16  ;;  %v181_v19 = vpop.f32.mrf.mxu1 }
  0x9f   :  { %195 = vst [vmem:[#allocation9] sm:$0xff] %v191_v17  ;;  %v190_v20 = vadd.f32 %v181_v19, %v144_v18 }
  0xa1   :  { %194 = vst [vmem:[#allocation8 + $0x8] sm:$0xff] %v190_v20 }
  0xa2   :  { %v140_v21 = vpop.f32.mrf.mxu2  ;;  %209 = dma.vmem_to_hbm [thread:$0]  %s202_s10, 256, %s204_s13, [#allocation4], %s428_s18, %s428_s18, %s429_s19  }
  0xa3   :  { %v146_v22 = vadd.f32 %v292_v8, %v140_v21  ;;  %v186_v23 = vpop.f32.mrf.mxu3 }
  0xa5   :  { %v192_v24 = vadd.f32 %v186_v23, %v146_v22 }
  0xa7   :  { %196 = vst [vmem:[#allocation9 + $0x8] sm:$0xff] %v192_v24 }
  0xa8   :  { %222 = dma.vmem_to_hbm [thread:$0]  %s215_s14, 256, %s217_s17, [#allocation10], %s428_s18, %s428_s18, %s429_s19  }
  0xa9   :  { %417 = dma.done.wait [#allocation4], 256  }
  0xaa   :  { %418 = vsyncadd [#allocation4], 4294967040 }
  0xab   :  { %419 = dma.done.wait [#allocation10], 256  }
  0xac   :  { %420 = vsyncadd [#allocation10], 4294967040 }
  0xad   :  { %231 = vsyncpa [#allocation3], 1 }
  0xae   :  { %232 = vsyncpa [#allocation6], 1 }
  0xaf   :  { %233 = vsyncpa [#allocation4], 1 }
  0xb0   :  { %234 = vsyncpa [#allocation10], 1 }

</bundles_post_ra>
